<compile_context>
chip_gen: v7x
topology: tpu7x:2x2x1
jax: 0.10.0
libtpu: 0.0.40
codegen_flags: <defaults>
</compile_context>

<pallas_src>
import functools

import jax
import jax.numpy as jnp
from jax.experimental import pallas as pl
from jax.experimental.pallas import tpu as pltpu


_LANE = 128        # TPU lane width; pad the contraction dim to a multiple of it.
_MAX_TM = 256      # row tile: fills the 256-wide MXU (v6e/v7x), 2x128 on v5e.
_MAX_TN = 512      # out-feature tile: bounds resident weight for large layers.


def _linear_relu_kernel(x_ref, w_ref, b_ref, o_ref, *, use_bf16):
    # x_ref: (tm, Kp)  w_ref: (Kp, tn)  b_ref: (1, tn)  o_ref: (tm, tn)
    x = x_ref[...]
    w = w_ref[...]
    if use_bf16:
        # bf16 MXU inputs, f32 accumulation (standard recipe on v5e/v6e/v7x).
        x = x.astype(jnp.bfloat16)
        w = w.astype(jnp.bfloat16)
    y = jnp.dot(x, w, preferred_element_type=jnp.float32)
    y = y + b_ref[...]                      # bias broadcast + ReLU stay in f32
    o_ref[...] = jnp.maximum(y, 0.0).astype(o_ref.dtype)


@functools.partial(jax.jit, static_argnames=("use_bf16",))
def linear_relu(x, w_t, b, *, use_bf16=True):
    """ReLU(x @ w_t + b) as a single Pallas TPU kernel.

    x:   [M, K] node features (rows may be any count; last tile is masked)
    w_t: [K, N] transposed linear weight
    b:   [N]    bias
    """
    M, K = x.shape
    Kw, N = w_t.shape
    assert Kw == K, "weight / feature contraction dims must match"

    # Pad the contraction dim up to a full lane multiple (zeros are inert).
    Kp = ((K + _LANE - 1) // _LANE) * _LANE
    if Kp != K:
        x = jnp.pad(x, ((0, 0), (0, Kp - K)))
        w_t = jnp.pad(w_t, ((0, Kp - K), (0, 0)))

    b2 = b.reshape(1, N).astype(jnp.float32)

    # Tile choices: single grid step when the array is small, otherwise large
    # aligned tiles. Partial trailing tiles are handled by Pallas (masked
    # writeback), so M and N need not divide evenly.
    tm = M if M <= _MAX_TM else _MAX_TM
    tn = N if N <= _MAX_TN else _MAX_TN
    # N axis first / M axis last (fastest): the weight column-block stays
    # resident across all row tiles (constant block index => no re-DMA).
    grid = (pl.cdiv(N, tn), pl.cdiv(M, tm))

    kernel = functools.partial(_linear_relu_kernel, use_bf16=use_bf16)

    return pl.pallas_call(
        kernel,
        out_shape=jax.ShapeDtypeStruct((M, N), x.dtype),
        grid_spec=pltpu.PrefetchScalarGridSpec(
            num_scalar_prefetch=0,
            grid=grid,
            in_specs=[
                pl.BlockSpec((tm, Kp), lambda j, i: (i, 0)),   # x row tile
                pl.BlockSpec((Kp, tn), lambda j, i: (0, j)),   # weight col tile
                pl.BlockSpec((1, tn), lambda j, i: (0, j)),    # bias row
            ],
            out_specs=pl.BlockSpec((tm, tn), lambda j, i: (i, j)),
        ),
        compiler_params=pltpu.CompilerParams(
            dimension_semantics=("parallel", "parallel"),
            vmem_limit_bytes=48 * 1024 * 1024,   # headroom-safe on v5e/v6e/v7x
        ),
    )(x, w_t, b2)


class NodeApplyModule:
    """JAX/Pallas port of the PyTorch NodeApplyModule.

    Applies Linear(in_feats, out_feats) + ReLU to every tensor in the
    node-data dict, fused into a single Pallas call.
    """

    def __init__(self, in_feats, out_feats, key):
        # Match nn.Linear default init: U(-1/sqrt(in_feats), 1/sqrt(in_feats)).
        kw, kb = jax.random.split(key)
        bound = 1.0 / (in_feats ** 0.5)
        # PyTorch stores weight as [out, in]; keep the transposed [in, out]
        # layout so the kernel consumes it directly on the MXU.
        self.w_t = jax.random.uniform(
            kw, (in_feats, out_feats), jnp.float32, -bound, bound)
        self.b = jax.random.uniform(
            kb, (out_feats,), jnp.float32, -bound, bound)

    def __call__(self, node_data: dict) -> dict:
        names = list(node_data.keys())
        feats = [node_data[n] for n in names]
        rows = [f.shape[0] for f in feats]

        # Fuse every feature tensor into one kernel launch: weight/bias are
        # DMA'd once and stay resident; the grid gets enough steps to pipeline.
        stacked = feats[0] if len(feats) == 1 else jnp.concatenate(feats, axis=0)
        out = linear_relu(stacked, self.w_t, self.b)

        result, off = {}, 0
        for n, r in zip(names, rows):
            result[n] = out[off:off + r]
            off += r
        return result


if __name__ == "__main__":
    key = jax.random.PRNGKey(0)
    k_param, k_h, k_z = jax.random.split(key, 3)

    # Deliberately NOT a multiple of the tile size to exercise ragged handling.
    N_NODES, IN_FEATS, OUT_FEATS = 200, 64, 128

    module = NodeApplyModule(IN_FEATS, OUT_FEATS, k_param)

    # node.data is a dict of per-node feature tensors, all [N_nodes, in_feats].
    node_data = {
        "h": jax.random.normal(k_h, (N_NODES, IN_FEATS), jnp.float32),
        "z": jax.random.normal(k_z, (N_NODES, IN_FEATS), jnp.float32),
    }

    result = module(node_data)
    result = jax.tree_util.tree_map(jax.block_until_ready, result)

    # Sanity check against a plain-JAX f32 reference. bf16 matmul inputs with
    # f32 accumulation -> ~1e-2 relative error, so the tolerance is loosened.
    for name, feat in node_data.items():
        ref = jnp.maximum(feat @ module.w_t + module.b, 0.0)
        assert result[name].shape == (N_NODES, OUT_FEATS)
        assert jnp.allclose(result[name], ref, atol=3e-2, rtol=3e-2)

    print("KERNEL_OK")
</pallas_src>

<mosaic_0001>
module attributes {stable_mosaic.version = 11 : i64} {
  func.func @_linear_relu_kernel(%arg0: i32, %arg1: i32, %arg2: memref<256x128xf32, #tpu.memory_space<vmem>>, %arg3: memref<128x128xf32, #tpu.memory_space<vmem>>, %arg4: memref<1x128xf32, #tpu.memory_space<vmem>>, %arg5: memref<256x128xf32, #tpu.memory_space<vmem>>) attributes {dimension_semantics = [#tpu.dimension_semantics<parallel>, #tpu.dimension_semantics<parallel>], iteration_bounds = array<i64: 1, 2>, scalar_prefetch = 0 : i64, scratch_operands = 0 : i64, tpu.core_type = #tpu.core_type<tc>, window_params = [{transform_indices = @transform_0, window_bounds = array<i64: 256, 128>}, {transform_indices = @transform_1, window_bounds = array<i64: 128, 128>}, {transform_indices = @transform_2, window_bounds = array<i64: 1, 128>}, {transform_indices = @transform_3, window_bounds = array<i64: 256, 128>}]} {
    %c0 = arith.constant 0 : index
    %c0_0 = arith.constant 0 : index
    %0 = vector.load %arg2[%c0, %c0_0] : memref<256x128xf32, #tpu.memory_space<vmem>>, vector<256x128xf32>
    %c0_1 = arith.constant 0 : index
    %c0_2 = arith.constant 0 : index
    %1 = vector.load %arg3[%c0_1, %c0_2] : memref<128x128xf32, #tpu.memory_space<vmem>>, vector<128x128xf32>
    %2 = arith.truncf %0 : vector<256x128xf32> to vector<256x128xbf16>
    %3 = arith.truncf %1 : vector<128x128xf32> to vector<128x128xbf16>
    %cst = arith.constant dense<0.000000e+00> : vector<256x128xf32>
    %4 = tpu.matmul %2, %3, %cst {dimension_numbers = #tpu.dot_dimension_numbers<[1], [0], [0], [1], [0, 0, 1, 1], [], []>} : vector<256x128xbf16>, vector<128x128xbf16>, vector<256x128xf32> -> vector<256x128xf32>
    %c0_3 = arith.constant 0 : index
    %c0_4 = arith.constant 0 : index
    %5 = vector.load %arg4[%c0_3, %c0_4] : memref<1x128xf32, #tpu.memory_space<vmem>>, vector<1x128xf32>
    %6 = vector.broadcast %5 : vector<1x128xf32> to vector<256x128xf32>
    %7 = arith.addf %4, %6 : vector<256x128xf32>
    %cst_5 = arith.constant 0.000000e+00 : f32
    %8 = vector.broadcast %cst_5 : f32 to vector<256x128xf32>
    %9 = arith.maximumf %7, %8 : vector<256x128xf32>
    %c0_6 = arith.constant 0 : index
    %c0_7 = arith.constant 0 : index
    %10 = vector.load %arg5[%c0_6, %c0_7] : memref<256x128xf32, #tpu.memory_space<vmem>>, vector<256x128xf32>
    tpu.vector_store %arg5[%c0_6, %c0_7], %9 {strides = array<i32>} : memref<256x128xf32, #tpu.memory_space<vmem>>, vector<256x128xf32>,
    return
  }
  func.func @transform_0(%arg0: i32, %arg1: i32) -> (i32, i32) {
    %c0_i32 = arith.constant 0 : i32
    %c0_i32_0 = arith.constant 0 : i32
    return %arg1, %c0_i32 : i32, i32
  }
  func.func @transform_1(%arg0: i32, %arg1: i32) -> (i32, i32) {
    %c0_i32 = arith.constant 0 : i32
    %c0_i32_0 = arith.constant 0 : i32
    return %c0_i32, %arg0 : i32, i32
  }
  func.func @transform_2(%arg0: i32, %arg1: i32) -> (i32, i32) {
    %c0_i32 = arith.constant 0 : i32
    %c0_i32_0 = arith.constant 0 : i32
    return %c0_i32, %arg0 : i32, i32
  }
  func.func @transform_3(%arg0: i32, %arg1: i32) -> (i32, i32) {
    %c0_i32 = arith.constant 0 : i32
    return %arg1, %arg0 : i32, i32
  }
}

</mosaic_0001>

<bundles_post_ra>
// kernel: linear_relu.1
= control target key start
LH: loop header
LB: loop body
LE: loop exit
PB: predicated region body
PF: predicated region fallthrough
CT: control target
= control target key end

     0   :  { %8 = vsyncpa [#allocation3], 0  ;;  %s1221_s0 = inlined_call_operand.vmem [shape: f32[400,128], index: 0, kind: input, shape index: {}]   ;;  %s1222_s1 = inlined_call_operand.vmem [shape: f32[128,128], index: 1, kind: input, shape index: {}]   ;;  %s1223_s2 = inlined_call_operand.vmem [shape: f32[1,128], index: 2, kind: input, shape index: {}]   ;;  %s1224_s3 = inlined_call_operand.hbm [shape: f32[400,128], index: 3, kind: output, shape index: {}]  }
   0x1   :  { %10 = vsyncpa [#allocation3 + $0x1], 0  ;;  %s934_s12 = smov 0   ;;  %s936_s13 = smov 0  }
   0x2   :  { %s938_s14 = smov 0   ;;  %s940_s15 = smov 0  }
   0x3   :  { %s942_s16 = smov 0   ;;  %s944_s17 = smov 0  }
   0x4 LB: > { %s666_s18 = sadd.s32 4294967295, %s909_s17   ;;  %s667_s19 = sadd.s32 4294967294, %s909_s17   ;;  %s909_s17 = sphi %s944_s17, %s16_s17   ;;  %s905_s16 = sphi %s942_s16, %s1231_s16   ;;  %s901_s15 = sphi %s940_s15, %s1230_s15   ;;  %s897_s14 = sphi %s938_s14, %s1229_s14   ;;  %s893_s13 = sphi %s936_s13, %s1228_s13   ;;  %s889_s12 = sphi %s934_s12, %s1227_s12  }
   0x5   : > { %s25_s20 = sadd.s32 1, %s905_s16  ;;  %s115_s21 = sadd.s32 1, %s897_s14 }
   0x6   : > { %p26_p0 = scmp.ge.s32.totalorder %s25_s20, 2  ;;  %p125_p1 = scmp.ne.s32.totalorder %s897_s14, %s893_s13 }
   0x7   : > { %p126_p2 = scmp.eq.s32.totalorder %s666_s18, 1  ;;  %p131_p3 = scmp.ne.s32.totalorder %s893_s13, %s889_s12 }
   0x8   : > { %s1233_s20 = smov (%p26_p0, %s25_s20), 0  ;;  %p132_p5 = scmp.eq.s32.totalorder %s667_s19, 1 }
   0x9   : > { %p974_p4 = por %p126_p2, %p125_p1  ;;  %s110_s23 = ssub.s32 %s905_s16, %s1233_s20 }
   0xa   : > { %p672_p6 = scmp.ge.s32.totalorder %s909_s17, 1  ;;  %p113_p7 = scmp.eq.s32.totalorder %s110_s23, 0 }
   0xb   : > { %p981_p8 = por %p132_p5, %p131_p3  ;;  %p180_p9 = scmp.lt.s32.totalorder %s909_s17, 3 }
   0xc   : > { %s987_s25 = scalar_select %p113_p7, %s897_s14, %s115_s21  }
   0xd   : > { %p181_p10 = pnand %p672_p6, %p180_p9 }
   0xe   : > { %v274_v0 = vld [vmem:[%s1222_s1] sm:$0xff] (!%p181_p10)  ;;  %v275_v1 = vld [vmem:[%s1222_s1 + $0x8] sm:$0xff] (!%p181_p10)  ;;  %v276_v2 = vld [vmem:[%s1222_s1 + $0x10] sm:$0xff] (!%p181_p10)  ;;  %s999_s5 = sshll.u32 (!%p181_p10), %s901_s15, 5  ;;  %s212_s6 = sand.u32 (!%p181_p10), 1, %s893_s13  }
   0xf   : > { %184 = sbr.rel (%p181_p10) target bundleno = 322 (0x142), region = 32  ;;  %v306_v3 = vpack.c.bf16 (!%p181_p10), %v275_v1, %v274_v0  ;;  %v277_v4 = vld [vmem:[%s1222_s1 + $0x18] sm:$0xff] (!%p181_p10)  ;;  %p220_p11 = scmp.lt.s32.totalorder (!%p181_p10), %s999_s5, 49  ;;  %v278_v6 = vld [vmem:[%s1222_s1 + $0x20] sm:$0xff] (!%p181_p10)  ;;  %v279_v7 = vld [vmem:[%s1222_s1 + $0x28] sm:$0xff] (!%p181_p10) }
  0x10   : > { %v307_v5 = vpack.c.bf16 (!%p181_p10), %v277_v4, %v276_v2  ;;  %v308_v8 = vpack.c.bf16 (!%p181_p10), %v279_v7, %v278_v6  ;;  %v280_v9 = vld [vmem:[%s1222_s1 + $0x30] sm:$0xff] (!%p181_p10)  ;;  %v281_v10 = vld [vmem:[%s1222_s1 + $0x38] sm:$0xff] (!%p181_p10)  ;;  %v282_v18 = vld [vmem:[%s1222_s1 + $0x40] sm:$0xff] (!%p181_p10)  ;;  %s673_s9 = sshll.u32 (!%p181_p10), %s212_s6, 8  ;;  %s1155_s10 = scalar_lea.sflag (!%p181_p10), [#allocation3], %s212_s6 }
  0x11   : > { %711 = vmatprep.subr.bf16.mxu0 (!%p181_p10), %v306_v3  ;;  %759 = vmatprep.subr.bf16.mxu1 (!%p181_p10), %v306_v3  ;;  %v309_v16 = vpack.c.bf16 (!%p181_p10), %v281_v10, %v280_v9  ;;  %v283_v19 = vld [vmem:[%s1222_s1 + $0x48] sm:$0xff] (!%p181_p10)  ;;  %v284_v21 = vld [vmem:[%s1222_s1 + $0x50] sm:$0xff] (!%p181_p10)  ;;  %v285_v22 = vld [vmem:[%s1222_s1 + $0x58] sm:$0xff] (!%p181_p10) }
  0x12   : > { %712 = vmatpush3.bf16.msra.mxu0 (!%p181_p10), %v306_v3  ;;  %767 = vmatpush3.bf16.msra.mxu1 (!%p181_p10), %v306_v3  ;;  %v310_v20 = vpack.c.bf16 (!%p181_p10), %v283_v19, %v282_v18  ;;  %v311_v23 = vpack.c.bf16 (!%p181_p10), %v285_v22, %v284_v21  ;;  %v286_v24 = vld [vmem:[%s1222_s1 + $0x60] sm:$0xff] (!%p181_p10)  ;;  %v287_v25 = vld [vmem:[%s1222_s1 + $0x68] sm:$0xff] (!%p181_p10)  ;;  %v288_v27 = vld [vmem:[%s1222_s1 + $0x70] sm:$0xff] (!%p181_p10) }
  0x13   : > { %713 = vmatprep.subr.bf16.mxu0 (!%p181_p10), %v307_v5  ;;  %760 = vmatprep.subr.bf16.mxu1 (!%p181_p10), %v307_v5  ;;  %v312_v26 = vpack.c.bf16 (!%p181_p10), %v287_v25, %v286_v24  ;;  %v289_v28 = vld [vmem:[%s1222_s1 + $0x78] sm:$0xff] (!%p181_p10) }
  0x14   : > { %v313_v29 = vpack.c.bf16 (!%p181_p10), %v289_v28, %v288_v27 }
  0x16   : > { %s221_s18 = scalar_select %p220_p11, %s999_s5, 49  ;;  %714 = vmatpush3.bf16.msra.mxu0 %v307_v5  ;;  %768 = vmatpush3.bf16.msra.mxu1 %v307_v5 }
  0x17   : > { %715 = vmatprep.subr.bf16.mxu0 %v308_v8  ;;  %761 = vmatprep.subr.bf16.mxu1 %v308_v8  ;;  %s555_s11 = ssub.s32 (%p974_p4), 50, %s999_s5 }
  0x18   : > { %s675_s19 = sshll.u32 %s221_s18, 3  ;;  %p556_p12 = scmp.lt.s32.totalorder (%p974_p4), %s555_s11, 32 }
  0x19   : > { %s1021_s30 = scalar_lea.vmem %s1221_s0, %s675_s19 }
  0x1a   : > { %v242_v11 = vld [vmem:[%s1021_s30] sm:$0xff]  ;;  %v243_v12 = vld [vmem:[%s1021_s30 + $0x8] sm:$0xff]  ;;  %716 = vmatpush3.bf16.msra.mxu0 %v308_v8  ;;  %769 = vmatpush3.bf16.msra.mxu1 %v308_v8  ;;  %v244_v30 = vld [vmem:[%s1021_s30 + $0x10] sm:$0xff] }
  0x1b   : > { %v258_v13 = vld [vmem:[%s1021_s30 + $0x80] sm:$0xff]  ;;  %v290_v14 = vpack.c.bf16 %v243_v12, %v242_v11  ;;  %v259_v15 = vld [vmem:[%s1021_s30 + $0x88] sm:$0xff]  ;;  %717 = vmatprep.subr.bf16.mxu0 %v309_v16  ;;  %762 = vmatprep.subr.bf16.mxu1 %v309_v16  ;;  %v245_v31 = vld [vmem:[%s1021_s30 + $0x18] sm:$0xff] }
  0x1c   : > { %v298_v17 = vpack.c.bf16 %v259_v15, %v258_v13  ;;  %v260_v32 = vld [vmem:[%s1021_s30 + $0x90] sm:$0xff]  ;;  %v261_v33 = vld [vmem:[%s1021_s30 + $0x98] sm:$0xff]  ;;  %v246_v34 = vld [vmem:[%s1021_s30 + $0x20] sm:$0xff]  ;;  %v291_v38 = vpack.c.bf16 %v245_v31, %v244_v30 }
  0x1d   : > { %727 = vmatprep.mubr.bf16.mxu0 %v290_v14  ;;  %v247_v35 = vld [vmem:[%s1021_s30 + $0x28] sm:$0xff]  ;;  %v262_v36 = vld [vmem:[%s1021_s30 + $0xa0] sm:$0xff]  ;;  %v299_v39 = vpack.c.bf16 %v261_v33, %v260_v32  ;;  %v248_v42 = vld [vmem:[%s1021_s30 + $0x30] sm:$0xff] }
  0x1e   : > { %743 = vmatprep.mubr.bf16.mxu1 %v298_v17  ;;  %718 = vmatpush3.bf16.msra.mxu0 %v309_v16  ;;  %v263_v37 = vld [vmem:[%s1021_s30 + $0xa8] sm:$0xff]  ;;  %v292_v40 = vpack.c.bf16 %v247_v35, %v246_v34  ;;  %v249_v43 = vld [vmem:[%s1021_s30 + $0x38] sm:$0xff]  ;;  %v264_v44 = vld [vmem:[%s1021_s30 + $0xb0] sm:$0xff] }
  0x1f   : > { %770 = vmatpush3.bf16.msra.mxu1 %v309_v16  ;;  %719 = vmatprep.subr.bf16.mxu0 %v310_v20  ;;  %v300_v41 = vpack.c.bf16 %v263_v37, %v262_v36  ;;  %v265_v45 = vld [vmem:[%s1021_s30 + $0xb8] sm:$0xff]  ;;  %v250_v46 = vld [vmem:[%s1021_s30 + $0x40] sm:$0xff]  ;;  %v251_v47 = vld [vmem:[%s1021_s30 + $0x48] sm:$0xff]  ;;  %v293_v50 = vpack.c.bf16 %v249_v43, %v248_v42 }
  0x20   : > { %763 = vmatprep.subr.bf16.mxu1 %v310_v20  ;;  %v266_v48 = vld [vmem:[%s1021_s30 + $0xc0] sm:$0xff]  ;;  %v267_v49 = vld [vmem:[%s1021_s30 + $0xc8] sm:$0xff]  ;;  %v301_v51 = vpack.c.bf16 %v265_v45, %v264_v44  ;;  %v294_v52 = vpack.c.bf16 %v251_v47, %v250_v46  ;;  %v252_v54 = vld [vmem:[%s1021_s30 + $0x50] sm:$0xff] }
  0x21   : > { %v302_v53 = vpack.c.bf16 %v267_v49, %v266_v48  ;;  %v253_v55 = vld [vmem:[%s1021_s30 + $0x58] sm:$0xff]  ;;  %v268_v56 = vld [vmem:[%s1021_s30 + $0xd0] sm:$0xff]  ;;  %v254_v58 = vld [vmem:[%s1021_s30 + $0x60] sm:$0xff] }
  0x22   : > { %720 = vmatpush3.bf16.msra.mxu0 %v310_v20  ;;  %v269_v57 = vld [vmem:[%s1021_s30 + $0xd8] sm:$0xff]  ;;  %v255_v59 = vld [vmem:[%s1021_s30 + $0x68] sm:$0xff]  ;;  %v270_v60 = vld [vmem:[%s1021_s30 + $0xe0] sm:$0xff]  ;;  %v295_v62 = vpack.c.bf16 %v253_v55, %v252_v54 }
  0x23   : > { %771 = vmatpush3.bf16.msra.mxu1 %v310_v20  ;;  %721 = vmatprep.subr.bf16.mxu0 %v311_v23  ;;  %v271_v61 = vld [vmem:[%s1021_s30 + $0xe8] sm:$0xff]  ;;  %v303_v63 = vpack.c.bf16 %v269_v57, %v268_v56  ;;  %v296_v0 = vpack.c.bf16 %v255_v59, %v254_v58  ;;  %v256_v2 = vld [vmem:[%s1021_s30 + $0x70] sm:$0xff]  ;;  %v257_v3 = vld [vmem:[%s1021_s30 + $0x78] sm:$0xff] }
  0x24   : > { %764 = vmatprep.subr.bf16.mxu1 %v311_v23  ;;  %v304_v1 = vpack.c.bf16 %v271_v61, %v270_v60  ;;  %v272_v4 = vld [vmem:[%s1021_s30 + $0xf0] sm:$0xff]  ;;  %v273_v5 = vld [vmem:[%s1021_s30 + $0xf8] sm:$0xff]  ;;  %v297_v6 = vpack.c.bf16 %v257_v3, %v256_v2  ;;  %v1083_v8 = vld [vmem:[%s1223_s2] ss:$0 sm:$0xff]  ;;  %s1095_s30 = scalar_lea.vmem [#allocation2], %s673_s9 }
  0x25   : > { %v305_v7 = vpack.c.bf16 %v273_v5, %v272_v4 }
  0x26   : > { %722 = vmatpush3.bf16.msra.mxu0 %v311_v23 }
  0x27   : > { %772 = vmatpush3.bf16.msra.mxu1 %v311_v23  ;;  %723 = vmatprep.subr.bf16.mxu0 %v312_v26 }
  0x28   : > { %765 = vmatprep.subr.bf16.mxu1 %v312_v26 }
  0x2a   : > { %724 = vmatpush3.bf16.msra.mxu0 %v312_v26 }
  0x2b   : > { %773 = vmatpush3.bf16.msra.mxu1 %v312_v26  ;;  %725 = vmatprep.subr.bf16.mxu0 %v313_v29 }
  0x2c   : > { %766 = vmatprep.subr.bf16.mxu1 %v313_v29 }
  0x2e   : > { %726 = vmatpush3.bf16.msra.mxu0 %v313_v29 }
  0x2f   : > { %774 = vmatpush3.bf16.msra.mxu1 %v313_v29 }
  0x31   : > { %728 = vmatmul.mubr.bf16.vlgmr.msra.gmra.mrb[0].mxu0 %v291_v38 }
  0x32   : > { %744 = vmatmul.mubr.bf16.vlgmr.msra.gmra.mrb[0].mxu1 %v299_v39  ;;  %731 = vmatprep.mubr.bf16.mxu0 %v292_v40 }
  0x33   : > { %747 = vmatprep.mubr.bf16.mxu1 %v300_v41 }
  0x39   : > { %732 = vmatmul.mubr.bf16.gmra.mrb[4].mxu0 %v293_v50 }
  0x3a   : > { %748 = vmatmul.mubr.bf16.gmra.mrb[4].mxu1 %v301_v51  ;;  %735 = vmatprep.mubr.bf16.mxu0 %v294_v52 }
  0x3b   : > { %751 = vmatprep.mubr.bf16.mxu1 %v302_v53 }
  0x41   : > { %736 = vmatmul.mubr.bf16.gmra.mrb[8].mxu0 %v295_v62 }
  0x42   : > { %752 = vmatmul.mubr.bf16.gmra.mrb[8].mxu1 %v303_v63  ;;  %739 = vmatprep.mubr.bf16.mxu0 %v296_v0 }
  0x43   : > { %755 = vmatprep.mubr.bf16.mxu1 %v304_v1 }
  0x49   : > { %740 = vmatmul.mubr.bf16.gmra.mrb[12].mxu0 %v297_v6 }
  0x4a   : > { %756 = vmatmul.mubr.bf16.gmra.mrb[12].mxu1 %v305_v7 }
 0x104   : > { %v729_v9 = vpop.f32.mrb[0].mxu0 }
 0x105   : > { %v745_v10 = vpop.f32.mrb[0].mxu1  ;;  %v364_v11 = vadd.f32 %v729_v9, %v1083_v8  ;;  %v355_v13 = vpop.f32.mrb[1].mxu0 }
 0x106   : > { %v428_v12 = vadd.f32 %v745_v10, %v1083_v8  ;;  %v419_v14 = vpop.f32.mrb[1].mxu1  ;;  %v356_v15 = vadd.f32 %v1083_v8, %v355_v13  ;;  %v730_v17 = vpop.f32.mrb[2].mxu0 }
 0x107   : > { %v420_v16 = vadd.f32 %v1083_v8, %v419_v14  ;;  %v746_v18 = vpop.f32.mrb[2].mxu1  ;;  %v484_v19 = vmax.f32 %v364_v11, 0.0  ;;  %v367_v21 = vadd.f32 %v730_v17, %v1083_v8  ;;  %v358_v23 = vpop.f32.mrb[3].mxu0 }
 0x108   : > { %v500_v20 = vmax.f32 %v428_v12, 0.0  ;;  %v431_v22 = vadd.f32 %v746_v18, %v1083_v8  ;;  %v422_v24 = vpop.f32.mrb[3].mxu1  ;;  %v482_v25 = vmax.f32 %v356_v15, 0.0  ;;  %v359_v27 = vadd.f32 %v1083_v8, %v358_v23 }
 0x109   : > { %v498_v26 = vmax.f32 %v420_v16, 0.0  ;;  %v423_v28 = vadd.f32 %v1083_v8, %v422_v24  ;;  %516 = vst [vmem:[%s1095_s30 + $0x10] sm:$0xff] %v484_v19  ;;  %v485_v29 = vmax.f32 %v367_v21, 0.0 }
 0x10a   : > { %532 = vst [vmem:[%s1095_s30 + $0x90] sm:$0xff] %v500_v20  ;;  %v501_v30 = vmax.f32 %v431_v22, 0.0  ;;  %514 = vst [vmem:[%s1095_s30] sm:$0xff] %v482_v25  ;;  %v483_v31 = vmax.f32 %v359_v27, 0.0 }
 0x10b   : > { %530 = vst [vmem:[%s1095_s30 + $0x80] sm:$0xff] %v498_v26  ;;  %v499_v32 = vmax.f32 %v423_v28, 0.0  ;;  %517 = vst [vmem:[%s1095_s30 + $0x18] sm:$0xff] %v485_v29 }
 0x10c   : > { %533 = vst [vmem:[%s1095_s30 + $0x98] sm:$0xff] %v501_v30  ;;  %515 = vst [vmem:[%s1095_s30 + $0x8] sm:$0xff] %v483_v31  ;;  %v733_v33 = vpop.f32.mrb[4].mxu0 }
 0x10d   : > { %531 = vst [vmem:[%s1095_s30 + $0x88] sm:$0xff] %v499_v32  ;;  %v749_v34 = vpop.f32.mrb[4].mxu1  ;;  %v380_v35 = vadd.f32 %v733_v33, %v1083_v8  ;;  %v371_v37 = vpop.f32.mrb[5].mxu0 }
 0x10e   : > { %v444_v36 = vadd.f32 %v749_v34, %v1083_v8  ;;  %v435_v38 = vpop.f32.mrb[5].mxu1  ;;  %v372_v39 = vadd.f32 %v1083_v8, %v371_v37  ;;  %v734_v41 = vpop.f32.mrb[6].mxu0 }
 0x10f   : > { %v436_v40 = vadd.f32 %v1083_v8, %v435_v38  ;;  %v750_v42 = vpop.f32.mrb[6].mxu1  ;;  %v488_v43 = vmax.f32 %v380_v35, 0.0  ;;  %v383_v45 = vadd.f32 %v734_v41, %v1083_v8  ;;  %v374_v47 = vpop.f32.mrb[7].mxu0 }
 0x110   : > { %v504_v44 = vmax.f32 %v444_v36, 0.0  ;;  %v447_v46 = vadd.f32 %v750_v42, %v1083_v8  ;;  %v438_v48 = vpop.f32.mrb[7].mxu1  ;;  %v486_v49 = vmax.f32 %v372_v39, 0.0  ;;  %v375_v51 = vadd.f32 %v1083_v8, %v374_v47 }
 0x111   : > { %v502_v50 = vmax.f32 %v436_v40, 0.0  ;;  %v439_v52 = vadd.f32 %v1083_v8, %v438_v48  ;;  %520 = vst [vmem:[%s1095_s30 + $0x30] sm:$0xff] %v488_v43  ;;  %v489_v53 = vmax.f32 %v383_v45, 0.0 }
 0x112   : > { %536 = vst [vmem:[%s1095_s30 + $0xb0] sm:$0xff] %v504_v44  ;;  %v505_v54 = vmax.f32 %v447_v46, 0.0  ;;  %518 = vst [vmem:[%s1095_s30 + $0x20] sm:$0xff] %v486_v49  ;;  %v487_v55 = vmax.f32 %v375_v51, 0.0 }
 0x113   : > { %534 = vst [vmem:[%s1095_s30 + $0xa0] sm:$0xff] %v502_v50  ;;  %v503_v56 = vmax.f32 %v439_v52, 0.0  ;;  %521 = vst [vmem:[%s1095_s30 + $0x38] sm:$0xff] %v489_v53 }
 0x114   : > { %537 = vst [vmem:[%s1095_s30 + $0xb8] sm:$0xff] %v505_v54  ;;  %519 = vst [vmem:[%s1095_s30 + $0x28] sm:$0xff] %v487_v55  ;;  %v737_v57 = vpop.f32.mrb[8].mxu0 }
 0x115   : > { %535 = vst [vmem:[%s1095_s30 + $0xa8] sm:$0xff] %v503_v56  ;;  %v753_v58 = vpop.f32.mrb[8].mxu1  ;;  %v396_v59 = vadd.f32 %v737_v57, %v1083_v8  ;;  %v387_v61 = vpop.f32.mrb[9].mxu0 }
 0x116   : > { %v460_v60 = vadd.f32 %v753_v58, %v1083_v8  ;;  %v451_v62 = vpop.f32.mrb[9].mxu1  ;;  %v388_v63 = vadd.f32 %v1083_v8, %v387_v61  ;;  %v738_v1 = vpop.f32.mrb[10].mxu0 }
 0x117   : > { %v452_v0 = vadd.f32 %v1083_v8, %v451_v62  ;;  %v754_v2 = vpop.f32.mrb[10].mxu1  ;;  %v492_v3 = vmax.f32 %v396_v59, 0.0  ;;  %v399_v5 = vadd.f32 %v738_v1, %v1083_v8  ;;  %v390_v7 = vpop.f32.mrb[11].mxu0 }
 0x118   : > { %v508_v4 = vmax.f32 %v460_v60, 0.0  ;;  %v463_v6 = vadd.f32 %v754_v2, %v1083_v8  ;;  %v454_v9 = vpop.f32.mrb[11].mxu1  ;;  %v490_v10 = vmax.f32 %v388_v63, 0.0  ;;  %v391_v12 = vadd.f32 %v1083_v8, %v390_v7 }
 0x119   : > { %v506_v11 = vmax.f32 %v452_v0, 0.0  ;;  %v455_v13 = vadd.f32 %v1083_v8, %v454_v9  ;;  %524 = vst [vmem:[%s1095_s30 + $0x50] sm:$0xff] %v492_v3  ;;  %v493_v14 = vmax.f32 %v399_v5, 0.0 }
 0x11a   : > { %540 = vst [vmem:[%s1095_s30 + $0xd0] sm:$0xff] %v508_v4  ;;  %v509_v15 = vmax.f32 %v463_v6, 0.0  ;;  %522 = vst [vmem:[%s1095_s30 + $0x40] sm:$0xff] %v490_v10  ;;  %v491_v16 = vmax.f32 %v391_v12, 0.0 }
 0x11b   : > { %538 = vst [vmem:[%s1095_s30 + $0xc0] sm:$0xff] %v506_v11  ;;  %v507_v17 = vmax.f32 %v455_v13, 0.0  ;;  %525 = vst [vmem:[%s1095_s30 + $0x58] sm:$0xff] %v493_v14 }
 0x11c   : > { %541 = vst [vmem:[%s1095_s30 + $0xd8] sm:$0xff] %v509_v15  ;;  %523 = vst [vmem:[%s1095_s30 + $0x48] sm:$0xff] %v491_v16  ;;  %v741_v18 = vpop.f32.mrb[12].mxu0 }
 0x11d   : > { %539 = vst [vmem:[%s1095_s30 + $0xc8] sm:$0xff] %v507_v17  ;;  %v757_v19 = vpop.f32.mrb[12].mxu1  ;;  %v412_v20 = vadd.f32 %v741_v18, %v1083_v8  ;;  %v403_v22 = vpop.f32.mrb[13].mxu0 }
 0x11e   : > { %v476_v21 = vadd.f32 %v757_v19, %v1083_v8  ;;  %v467_v23 = vpop.f32.mrb[13].mxu1  ;;  %v404_v24 = vadd.f32 %v1083_v8, %v403_v22  ;;  %v742_v26 = vpop.f32.mrb[14].mxu0 }
 0x11f   : > { %v468_v25 = vadd.f32 %v1083_v8, %v467_v23  ;;  %v758_v27 = vpop.f32.mrb[14].mxu1  ;;  %v496_v28 = vmax.f32 %v412_v20, 0.0  ;;  %v415_v30 = vadd.f32 %v742_v26, %v1083_v8  ;;  %v406_v32 = vpop.f32.mrb[15].mxu0  ;;  %553 = sbr.rel (!%p974_p4) target bundleno = 322 (0x142), region = 36 }
 0x120   : > { %v512_v29 = vmax.f32 %v476_v21, 0.0  ;;  %v479_v31 = vadd.f32 %v758_v27, %v1083_v8  ;;  %v470_v33 = vpop.f32.mrb[15].mxu1  ;;  %v494_v34 = vmax.f32 %v404_v24, 0.0  ;;  %v407_v36 = vadd.f32 %v1083_v8, %v406_v32 }
 0x121   : > { %v510_v35 = vmax.f32 %v468_v25, 0.0  ;;  %v471_v37 = vadd.f32 %v1083_v8, %v470_v33  ;;  %528 = vst [vmem:[%s1095_s30 + $0x70] sm:$0xff] %v496_v28  ;;  %v497_v38 = vmax.f32 %v415_v30, 0.0 }
 0x122   : > { %544 = vst [vmem:[%s1095_s30 + $0xf0] sm:$0xff] %v512_v29  ;;  %v513_v39 = vmax.f32 %v479_v31, 0.0  ;;  %526 = vst [vmem:[%s1095_s30 + $0x60] sm:$0xff] %v494_v34  ;;  %v495_v40 = vmax.f32 %v407_v36, 0.0 }
 0x123   : > { %542 = vst [vmem:[%s1095_s30 + $0xe0] sm:$0xff] %v510_v35  ;;  %v511_v41 = vmax.f32 %v471_v37, 0.0  ;;  %529 = vst [vmem:[%s1095_s30 + $0x78] sm:$0xff] %v497_v38 }
 0x124   : > { %545 = vst [vmem:[%s1095_s30 + $0xf8] sm:$0xff] %v513_v39  ;;  %527 = vst [vmem:[%s1095_s30 + $0x68] sm:$0xff] %v495_v40 }
 0x125   : > { %543 = vst [vmem:[%s1095_s30 + $0xe8] sm:$0xff] %v511_v41 }
 0x126   : > { %s1235_s11 = smov (!%p556_p12, %s555_s11), 32 }
 0x127   : > { %s1160_s18 = sshll.u32 %s1235_s11, 7 }
 0x128   : > { %s560_s19 = ssub.s32 4096, %s1160_s18 }
 0x129   : > { %561 = vsyncadd %s1155_s10, %s560_s19  ;;  %p680_p13 = scmp.ne.s32.totalorder %s1160_s18, 0  ;;  %s686_s21 = sshll.u32 %s901_s15, 12 }
 0x12a   : > { %s1169_s26 = scalar_lea.hbm %s1224_s3, %s686_s21  ;;  %s567_s5 = sshll.u32 %s1095_s30, 4  ;;  %s1172_s5 = int_to_ptr.vmem [resolvable:$true] %s567_s5 }
 0x12b   : > { %s831_s27 = scalar_lea.vmem %s1172_s5, %s1160_s18  ;;  %s911_s28 = smov [#allocation2]  }
 0x12c   : > { %p832_p0 = scmp.ne.s32.totalorder %s1172_s5, %s831_s27  ;;  %s835_s29 = sshll.u32 %s911_s28, 4  ;;  %s836_s29 = int_to_ptr.vmem [resolvable:$false] %s835_s29 }
 0x12d   : > { %s837_s15 = scalar_lea.vmem %s836_s29, 8192  ;;  %p838_p3 = scmp.lt.s32.totalorder %s1172_s5, %s836_s29 }
 0x12e   : > { %p833_p1 = pnand %p832_p0, %p680_p13  ;;  %p839_p4 = scmp.lt.s32.totalorder %s837_s15, %s831_s27 }
 0x130   : > { %p834_p2 = pneg %p833_p1  ;;  %p840_p5 = por %p839_p4, %p838_p3 }
 0x132   : > { %p841_p6 = pnand %p840_p5, %p834_p2 }
 0x134   : > { %844 = shalt.err (!%p841_p6)
}
 0x135   : > { %s845_s4 = scalar_lea.hbm %s1169_s26, %s1160_s18  ;;  %s849_s8 = scalar_lea.hbm %s1224_s3, 6400 }
 0x136   : > { %p846_p7 = scmp.ne.s32.totalorder %s1169_s26, %s845_s4  ;;  %p850_p11 = scmp.lt.u32.totalorder %s1169_s26, %s1224_s3 }
 0x137   : > { %p851_p12 = scmp.lt.u32.totalorder %s849_s8, %s845_s4  ;;  %p853_p1 = scmp.lt.u32.totalorder %s845_s4, %s1169_s26 }
 0x138   : > { %p847_p9 = pnand %p846_p7, %p680_p13 }
 0x139   : > { %p852_p0 = por %p851_p12, %p850_p11 }
 0x13a   : > { %p848_p10 = pneg %p847_p9 }
 0x13b   : > { %p854_p2 = por %p853_p1, %p852_p0 }
 0x13d   : > { %p855_p3 = pnand %p854_p2, %p848_p10 }
 0x13f   : > { %858 = shalt.err (!%p855_p3)
}
 0x140   : > { %s912_s11 = smov 128   ;;  %s913_s19 = smov 8  }
 0x141   : > { %573 = dma.vmem_to_hbm [thread:$0]  (%p680_p13), %s1172_s5, %s1160_s18, %s1169_s26, %s1155_s10, %s912_s11, %s912_s11, %s913_s19  }
 0x142 PF: > { %p780_p4 = scmp.ge.s32.totalorder %s909_s17, 2  ;;  %s582_s21 = sand.u32 1, %s889_s12  }
 0x143   : > { %s583_s23 = scalar_lea.sflag [#allocation3], %s582_s21 }
 0x144   : > { %p777_p5 = pnand %p780_p4, %p981_p8 }
 0x146   : > { %884 = dma.done.wait (!%p777_p5), %s583_s23, 4096  }
 0x147   : > { %886 = vsyncadd (!%p777_p5), %s583_s23, 4294963200  ;;  %s16_s17 = sadd.s32 1, %s909_s17   ;;  %s1227_s12 = smov %s893_s13 }
 0x148   : > { %p13_p6 = scmp.ge.s32.totalorder %s16_s17, 4   ;;  %s1228_s13 = smov %s897_s14 }
 0x149   : > { %s1229_s14 = smov %s987_s25  ;;  %s1230_s15 = smov %s905_s16 }
 0x14a   : > { %s1231_s16 = smov %s1233_s20  ;;  %15 = sbr.rel (!%p13_p6) target bundleno = 4 (0x4), region = 73 }
 0x151   :  { %588 = vsyncpa [#allocation3], 1 }
 0x152   :  { %590 = vsyncpa [#allocation3 + $0x1], 1 }

</bundles_post_ra>
